<compile_context>
chip_gen: v5e
topology: v5e:2x2
jax: 0.10.0
libtpu: 0.0.40
codegen_flags: <defaults>
</compile_context>

<pallas_src>
import functools

import jax
import jax.numpy as jnp
from jax import lax
from jax.experimental import pallas as pl
from jax.experimental.pallas import tpu as pltpu

TN = 128          # lane tile (fixed by hardware)
CHUNK = 1024      # rows per in-kernel fold step: (1024, 128) f32 ~ 512 KiB live
TM_MAX = 8192     # max rows per pipelined block: (8192, 128) f32 = 4 MiB / input


def _round_up(x, m):
    return ((x + m - 1) // m) * m


def _mse_sum_kernel(y_ref, t_ref, out_ref, acc_ref, *,
                    valid_rows, tm, chunk, needs_mask):
    """Accumulates sum((y - t)^2) over this core's blocks into an (8,128) VMEM
    accumulator; a single cross-lane reduce writes the per-core SMEM scalar on
    the last reduction step."""
    p = pl.program_id(0)                 # per-core (parallel) axis
    i = pl.program_id(1)                 # reduction axis
    n_i = pl.num_programs(1)

    @pl.when(i == 0)
    def _():
        acc_ref[...] = jnp.zeros_like(acc_ref)

    # Logical (unclamped) start row of this block inside the (rows, 128) slab.
    block_row0 = (p * n_i + i) * tm
    n_chunks = tm // chunk               # static >= 1

    def accumulate(masked):
        for c in range(n_chunks):        # static unrolled loop
            r0 = c * chunk               # static offset within the block
            e = (y_ref[pl.ds(r0, chunk), :].astype(jnp.float32)
                 - t_ref[pl.ds(r0, chunk), :].astype(jnp.float32))
            e2 = e * e
            if masked:
                # Zero rows past the end of the valid slab (their VMEM contents
                # are undefined for a partial block / re-read for an overrun
                # block).  jnp.where discards any NaN garbage.
                row_ids = (block_row0 + r0
                           + lax.broadcasted_iota(jnp.int32, (chunk, TN), 0))
                e2 = jnp.where(row_ids < valid_rows, e2, 0.0)
            # Fold (chunk, 128) -> (8, 128) with pure VPU adds.
            acc_ref[...] += jnp.sum(e2.reshape(chunk // 8, 8, TN), axis=0)

    if needs_mask:
        # Only the (at most one per core) partial / overrun block pays for the
        # iota+cmp+select; every full block runs the lean path.
        block_is_full = block_row0 + tm <= valid_rows

        @pl.when(block_is_full)
        def _():
            accumulate(masked=False)

        @pl.when(jnp.logical_not(block_is_full))
        def _():
            accumulate(masked=True)
    else:
        accumulate(masked=False)

    @pl.when(i == n_i - 1)
    def _():
        out_ref[0, 0] = jnp.sum(acc_ref[...])


def mse_forward(y, target):
    """Pallas equivalent of MSE.forward: mean((y - target)**2) -> scalar f32."""
    assert y.shape == target.shape, "y and target must have the same shape"
    n_elems = y.size

    yf = jnp.ravel(y)
    tf = jnp.ravel(target)

    # Lane-align by streaming only the 128-aligned prefix through the kernel and
    # folding the <=127-element tail in with a tiny jnp expression (no jnp.pad
    # copy of the full arrays).  For aligned sizes the slice is the identity.
    main = (n_elems // TN) * TN
    if main != n_elems:
        tail_sum = jnp.sum(
            (yf[main:].astype(jnp.float32) - tf[main:].astype(jnp.float32)) ** 2
        )
    else:
        tail_sum = jnp.float32(0.0)

    rows = main // TN
    if rows == 0:
        # Degenerate: fewer than 128 elements total; nothing to stream.
        return tail_sum / jnp.float32(n_elems)

    y2 = (yf if main == n_elems else yf[:main]).reshape(rows, TN)
    t2 = (tf if main == n_elems else tf[:main]).reshape(rows, TN)

    # Native sublane packing of the input dtypes (8 f32 / 16 bf16 / 32 int8).
    pack = 8
    for d in (y2.dtype, t2.dtype):
        pack = max(pack, 32 // max(1, jnp.dtype(d).itemsize))

    # Block rows: as large as possible (<= TM_MAX), multiple of the in-kernel
    # fold chunk (which itself satisfies any sublane packing).
    if rows >= CHUNK:
        tm = min(TM_MAX, (rows // CHUNK) * CHUNK)
        chunk = CHUNK
    else:
        tm = _round_up(rows, pack)
        chunk = tm
    num_blocks = pl.cdiv(rows, tm)

    # Split across both TensorCores (v7x) whenever there is more than one block.
    # Odd block counts give the second core one extra block whose input index is
    # clamped in bounds and whose contribution is fully masked to zero.  On
    # 1-TC chips (v5e/v6e) the parallel axis just serializes.
    num_cores = 2 if num_blocks >= 2 else 1
    steps = pl.cdiv(num_blocks, num_cores)
    last_block = num_blocks - 1

    needs_mask = (rows % tm != 0) or (num_cores * steps != num_blocks)
    kernel = functools.partial(
        _mse_sum_kernel,
        valid_rows=rows, tm=tm, chunk=chunk, needs_mask=needs_mask,
    )

    def in_index_map(p, i):
        # Clamp so an overrun grid step (odd block count, 2-core split) stays in
        # bounds; its contribution is masked to zero inside the kernel.
        return (jnp.minimum(p * steps + i, last_block), 0)

    # Double-buffered input blocks for both operands plus headroom for the
    # accumulator / temporaries.  Explicit so large blocks also fit v5e's
    # smaller default scoped-VMEM budget.
    block_bytes = tm * TN * (y2.dtype.itemsize + t2.dtype.itemsize)
    vmem_limit = int(min(112 << 20, max(16 << 20, 2 * block_bytes + (8 << 20))))

    partials = pl.pallas_call(
        kernel,
        out_shape=jax.ShapeDtypeStruct((num_cores, 1), jnp.float32),
        grid_spec=pltpu.PrefetchScalarGridSpec(
            num_scalar_prefetch=0,
            grid=(num_cores, steps),
            in_specs=[
                pl.BlockSpec((tm, TN), in_index_map),
                pl.BlockSpec((tm, TN), in_index_map),
            ],
            out_specs=pl.BlockSpec(
                (1, 1), lambda p, i: (p, 0), memory_space=pltpu.SMEM
            ),
            scratch_shapes=[pltpu.VMEM((8, TN), jnp.float32)],
        ),
        compiler_params=pltpu.CompilerParams(
            dimension_semantics=("parallel", "arbitrary"),
            vmem_limit_bytes=vmem_limit,
        ),
    )(y2, t2)

    return (jnp.sum(partials) + tail_sum) / jnp.float32(n_elems)


if __name__ == "__main__":
    key = jax.random.PRNGKey(0)

    # NCHW-shaped tensors (the loss is used on images), chosen to exercise:
    #  - the small single aligned block path,
    #  - the non-128-aligned-numel wrapper tail path,
    #  - the 2-block / 2-TensorCore split with a partial last block,
    #  - an odd block count (clamped, fully-masked overrun block on core 1).
    shapes = [
        (2, 4, 16, 16),
        (3, 5, 7, 11),
        (2, 3, 160, 200),
        (5, 4, 512, 256),
    ]
    for shape in shapes:
        key, k1, k2 = jax.random.split(key, 3)
        y = jax.random.normal(k1, shape, dtype=jnp.float32)
        target = jax.random.normal(k2, shape, dtype=jnp.float32)

        loss = mse_forward(y, target)
        jax.block_until_ready(loss)

        ref = jnp.mean((y - target) ** 2)
        assert jnp.allclose(loss, ref, rtol=1e-5, atol=1e-6), (
            shape, float(loss), float(ref))

    print("KERNEL_OK")
</pallas_src>

<mosaic_0001>
module attributes {stable_mosaic.version = 11 : i64} {
  func.func @_mse_sum_kernel(%arg0: i32, %arg1: i32, %arg2: memref<16x128xf32, #tpu.memory_space<vmem>>, %arg3: memref<16x128xf32, #tpu.memory_space<vmem>>, %arg4: memref<1x1xf32, #tpu.memory_space<smem>>, %arg5: memref<8x128xf32, #tpu.memory_space<vmem>>) attributes {dimension_semantics = [#tpu.dimension_semantics<parallel>, #tpu.dimension_semantics<arbitrary>], iteration_bounds = array<i64: 1, 1>, scalar_prefetch = 0 : i64, scratch_operands = 1 : i64, tpu.core_type = #tpu.core_type<tc>, window_params = [{transform_indices = @transform_0, window_bounds = array<i64: 16, 128>}, {transform_indices = @transform_1, window_bounds = array<i64: 16, 128>}, {transform_indices = @transform_2, window_bounds = array<i64: 1, 1>}]} {
    %c0_i32 = arith.constant 0 : i32
    %0 = arith.cmpi eq, %arg1, %c0_i32 : i32
    %1 = arith.extui %0 : i1 to i32
    %c0_i32_0 = arith.constant 0 : i32
    %2 = arith.cmpi ne, %1, %c0_i32_0 : i32
    scf.if %2 {
      %cst_10 = arith.constant 0.000000e+00 : f32
      %15 = vector.broadcast %cst_10 : f32 to vector<8x128xf32>
      %c0_11 = arith.constant 0 : index
      %c0_12 = arith.constant 0 : index
      %16 = vector.load %arg5[%c0_11, %c0_12] : memref<8x128xf32, #tpu.memory_space<vmem>>, vector<8x128xf32>
      tpu.vector_store %arg5[%c0_11, %c0_12], %15 {strides = array<i32>} : memref<8x128xf32, #tpu.memory_space<vmem>>, vector<8x128xf32>,
    } else {
    }
    %c0 = arith.constant 0 : index
    %c0_1 = arith.constant 0 : index
    %3 = vector.load %arg2[%c0, %c0_1] : memref<16x128xf32, #tpu.memory_space<vmem>>, vector<16x128xf32>
    %c0_2 = arith.constant 0 : index
    %c0_3 = arith.constant 0 : index
    %4 = vector.load %arg3[%c0_2, %c0_3] : memref<16x128xf32, #tpu.memory_space<vmem>>, vector<16x128xf32>
    %5 = arith.subf %3, %4 : vector<16x128xf32>
    %6 = arith.mulf %5, %5 : vector<16x128xf32>
    %c0_4 = arith.constant 0 : index
    %c0_5 = arith.constant 0 : index
    %7 = vector.load %arg5[%c0_4, %c0_5] : memref<8x128xf32, #tpu.memory_space<vmem>>, vector<8x128xf32>
    %8 = vector.shape_cast %6 : vector<16x128xf32> to vector<2x8x128xf32>
    %cst = arith.constant dense<0.000000e+00> : vector<8x128xf32>
    %9 = vector.multi_reduction <add>, %8, %cst [0] : vector<2x8x128xf32> to vector<8x128xf32>
    %10 = arith.addf %7, %9 : vector<8x128xf32>
    %c0_6 = arith.constant 0 : index
    %c0_7 = arith.constant 0 : index
    %11 = vector.load %arg5[%c0_6, %c0_7] : memref<8x128xf32, #tpu.memory_space<vmem>>, vector<8x128xf32>
    tpu.vector_store %arg5[%c0_6, %c0_7], %10 {strides = array<i32>} : memref<8x128xf32, #tpu.memory_space<vmem>>, vector<8x128xf32>,
    %c0_i32_8 = arith.constant 0 : i32
    %12 = arith.cmpi eq, %arg1, %c0_i32_8 : i32
    %13 = arith.extui %12 : i1 to i32
    %c0_i32_9 = arith.constant 0 : i32
    %14 = arith.cmpi ne, %13, %c0_i32_9 : i32
    scf.if %14 {
      %c0_10 = arith.constant 0 : index
      %c0_11 = arith.constant 0 : index
      %15 = vector.load %arg5[%c0_10, %c0_11] : memref<8x128xf32, #tpu.memory_space<vmem>>, vector<8x128xf32>
      %16 = vector.shape_cast %15 : vector<8x128xf32> to vector<1x8x128xf32>
      %cst_12 = arith.constant dense<0.000000e+00> : vector<1xf32>
      %17 = vector.multi_reduction <add>, %16, %cst_12 [1, 2] : vector<1x8x128xf32> to vector<1xf32>
      %18 = vector.shape_cast %17 : vector<1xf32> to vector<1x1x1xf32>
      %19 = vector.extract %18[0, 0, 0] : f32 from vector<1x1x1xf32>
      %c0_13 = arith.constant 0 : index
      %c0_14 = arith.constant 0 : index
      %20 = memref.load %arg4[%c0_13, %c0_14] : memref<1x1xf32, #tpu.memory_space<smem>>
      memref.store %19, %arg4[%c0_13, %c0_14] : memref<1x1xf32, #tpu.memory_space<smem>>
    } else {
    }
    return
  }
  func.func @transform_0(%arg0: i32, %arg1: i32) -> (i32, i32) {
    %c1_i32 = arith.constant 1 : i32
    %0 = arith.muli %arg0, %c1_i32 : i32
    %1 = arith.addi %0, %arg1 : i32
    %c0_i32 = arith.constant 0 : i32
    %2 = arith.minsi %1, %c0_i32 : i32
    %c0_i32_0 = arith.constant 0 : i32
    %c0_i32_1 = arith.constant 0 : i32
    return %2, %c0_i32_0 : i32, i32
  }
  func.func @transform_1(%arg0: i32, %arg1: i32) -> (i32, i32) {
    %c1_i32 = arith.constant 1 : i32
    %0 = arith.muli %arg0, %c1_i32 : i32
    %1 = arith.addi %0, %arg1 : i32
    %c0_i32 = arith.constant 0 : i32
    %2 = arith.minsi %1, %c0_i32 : i32
    %c0_i32_0 = arith.constant 0 : i32
    %c0_i32_1 = arith.constant 0 : i32
    return %2, %c0_i32_0 : i32, i32
  }
  func.func @transform_2(%arg0: i32, %arg1: i32) -> (i32, i32) {
    %c0_i32 = arith.constant 0 : i32
    %c0_i32_0 = arith.constant 0 : i32
    return %arg0, %c0_i32 : i32, i32
  }
}

</mosaic_0001>

<bundles_post_ra>
// kernel: tpu_custom_call.1
= control target key start
LH: loop header
LB: loop body
LE: loop exit
PB: predicated region body
PF: predicated region fallthrough
CT: control target
= control target key end

     0   :  { %7 = vsyncpa [#allocation4], 0  ;;  %s219_s0 = inlined_call_operand.hbm [shape: f32[16,128], index: 0, kind: input, shape index: {}]   ;;  %s220_s1 = inlined_call_operand.hbm [shape: f32[16,128], index: 1, kind: input, shape index: {}]   ;;  %s221_s2 = inlined_call_operand.hbm [shape: f32[1,1], index: 2, kind: output, shape index: {}]  }
   0x1   :  { %8 = vsyncpa [#allocation7], 0 }
   0x2   :  { %9 = vsyncpa [#allocation5], 0  ;;  %s20_s11 = sshll.u32 %s219_s0, 4  ;;  %s190_s12 = smov [#allocation3]   ;;  %s21_s11 = int_to_ptr.hbm [resolvable:$true] %s20_s11 }
   0x3   :  { %s22_s13 = sshll.u32 %s190_s12, 4  ;;  %s39_s16 = sshll.u32 %s220_s1, 4  ;;  %s23_s13 = int_to_ptr.vmem [resolvable:$true] %s22_s13  ;;  %s40_s16 = int_to_ptr.hbm [resolvable:$true] %s39_s16 }
   0x4   :  { %s191_s17 = smov 128   ;;  %s192_s18 = smov 8  }
   0x5   :  { %28 = dma.hbm_to_vmem [thread:$0]  %s21_s11, 256, %s23_s13, [#allocation4], %s191_s17, %s191_s17, %s192_s18  }
   0x6   :  { %s193_s19 = smov [#allocation6]  }
   0x7   :  { %s41_s20 = sshll.u32 %s193_s19, 4  ;;  %s42_s20 = int_to_ptr.vmem [resolvable:$true] %s41_s20 }
   0x8   :  { %47 = dma.hbm_to_vmem [thread:$0]  %s40_s16, 256, %s42_s20, [#allocation7], %s191_s17, %s191_s17, %s192_s18  }
   0x9   :  { %184 = dma.done.wait [#allocation4], 256  }
   0xa   :  { %185 = vsyncadd [#allocation4], 4294967040 }
   0xb   :  { %186 = dma.done.wait [#allocation7], 256  }
   0xc   :  { %187 = vsyncadd [#allocation7], 4294967040  ;;  %v69_v0 = vld [vmem:[#allocation3] sm:$0xff]  ;;  %v70_v1 = vld [vmem:[#allocation3 + $0x8] sm:$0xff]  ;;  %s101_s21 = sshll.u32 %s221_s2, 4  ;;  %s194_s23 = smov [#allocation8]   ;;  %s102_s21 = int_to_ptr.hbm [resolvable:$true] %s101_s21 }
   0xd   :  { %v71_v2 = vld [vmem:[#allocation6] sm:$0xff]  ;;  %v72_v3 = vld [vmem:[#allocation6 + $0x8] sm:$0xff] }
   0xe   :  { %v73_v4 = vsub.f32 %v69_v0, %v71_v2  ;;  %v74_v5 = vsub.f32 %v70_v1, %v72_v3 }
  0x10   :  { %v75_v6 = vmul.f32 %v73_v4, %v73_v4  ;;  %v76_v7 = vmul.f32 %v74_v5, %v74_v5 }
  0x12   :  { %v78_v8 = vadd.f32 %v76_v7, %v75_v6 }
  0x14   :  { %85 = vadd.xlane.f32.xlu0 %v78_v8 }
  0x87   :  { %v86_v9 = vpop.xlane.xlu0 %85 }
  0x88   :  { %v87_v10 = vrot.slane %v86_v9, 4 }
  0x8a   :  { %v88_v11 = vadd.f32 %v87_v10, %v86_v9 }
  0x8c   :  { %v89_v12 = vrot.slane %v88_v11, 2 }
  0x8e   :  { %v90_v13 = vadd.f32 %v89_v12, %v88_v11 }
  0x90   :  { %v91_v14 = vrot.slane %v90_v13, 1 }
  0x92   :  { %v92_v15 = vadd.f32 %v91_v14, %v90_v13 }
  0x94   :  { %117 = vpush %v92_v15 }
  0xc5   :  { %s118_s22 = spop %117 }
  0xc6   :  { %95 = sst [smem:[#allocation8]] %s118_s22 }
  0xc7   :  { %104 = dma.smem_to_hbm %s194_s23, 16, %s102_s21, [#allocation5]  }
  0xc8   :  { %188 = dma.done.wait [#allocation5], 16  }
  0xc9   :  { %189 = vsyncadd [#allocation5], 4294967280 }
  0xca   :  { %109 = sfence }
  0xcb   :  { %110 = vsyncpa [#allocation4], 1 }
  0xcc   :  { %111 = vsyncpa [#allocation7], 1 }
  0xcd   :  { %112 = vsyncpa [#allocation5], 1 }

</bundles_post_ra>
